<compile_context>
chip_gen: v7x
topology: tpu7x:2x2x1
jax: 0.10.0
libtpu: 0.0.40
codegen_flags: <defaults>
</compile_context>

<pallas_src>
import jax
import jax.numpy as jnp
from jax.experimental import pallas as pl
from jax.experimental.pallas import tpu as pltpu


def _attention_gate_kernel(g_ref, x_ref, wg_ref, wx_ref, cst_ref, bpsi_ref,
                           out_ref):
    """One (batch-block, pixel-tile) grid step.  T = pixel-tile width (lanes).

    g_ref:   (nb, F_g, T)  gating-signal pixels (channels on sublanes)
    x_ref:   (nb, F_l, T)  skip-connection pixels
    wg_ref:  (F_int, F_g)  W_g 1x1 conv weight, BN scale folded in
    wx_ref:  (F_int, F_l)  W_x 1x1 conv weight, BN scale folded in
    cst_ref: (F_int, 2)    col 0: combined BN bias (bg+bx); col 1: psi weight
    bpsi_ref:(1, 1) SMEM   psi BN bias (scalar)
    out_ref: (nb, F_l, T)  alpha * x
    """
    cst = cst_ref[...]                       # (F_int, 2) f32
    bias = cst[:, 0:1]                       # (F_int, 1)
    wpsi = cst[:, 1:2]                       # (F_int, 1)
    bpsi = bpsi_ref[0, 0]

    wg = wg_ref[...]
    wx = wx_ref[...]

    nb = g_ref.shape[0]
    for i in range(nb):                      # static, small batch block
        g = g_ref[i]                         # (F_g, T)
        x = x_ref[i]                         # (F_l, T)

        # relu(W_g(g) + W_x(x) + b): 1x1 convs as channel matmuls (MXU, f32 acc)
        a = (jnp.dot(wg, g, preferred_element_type=jnp.float32)
             + jnp.dot(wx, x, preferred_element_type=jnp.float32)
             + bias)
        a = jnp.maximum(a, 0.0)                              # (F_int, T) f32

        # psi: 1-channel 1x1 conv == weighted sublane reduce (VPU/XLU), then
        # BN bias (SMEM scalar) and sigmoid (EUP).
        s = jnp.sum(a * wpsi, axis=0, keepdims=True) + bpsi
        alpha = jax.nn.sigmoid(s)                            # (1, T) f32

        # Gate the skip connection.  x may be bf16 (bf16 I/O path): upcast for
        # the VPU multiply so the elementwise math stays f32 (v5e-safe).
        out_ref[i] = (alpha * x.astype(jnp.float32)).astype(out_ref.dtype)


def _round_up(x, m):
    return ((x + m - 1) // m) * m


def _plan_tiles(N, HW, F_g, F_l, F_int, io_bytes, budget_bytes, max_tile_hw):
    """Pick (nb, t_hw): per-step working set must fit the VMEM budget.

    Per step (double-buffered streamed blocks + f32 intermediates):
      stream = 2 * nb * t * (pad8(F_g) + 2*pad8(F_l)) * io_bytes   (g, x, out)
      interm = 2 * nb * t * pad8(F_int) * 4                        (a + dot tmp)
    """
    cg, cl, ci = _round_up(F_g, 8), _round_up(F_l, 8), _round_up(F_int, 8)

    def vmem(nb, t):
        stream = 2 * nb * t * (cg + 2 * cl) * io_bytes
        interm = 2 * nb * t * ci * 4
        return stream + interm

    # Largest lane-dense pixel tile (multiple of 128) that fits the budget.
    t_cap = max(128, (min(max_tile_hw, _round_up(HW, 128)) // 128) * 128)
    t_hw = 128
    for cand in range(t_cap, 127, -128):
        if vmem(1, cand) <= budget_bytes:
            t_hw = cand
            break

    nb = 1
    if HW <= t_hw:
        # Small-HW regime: whole feature map per step -> block over batch too
        # so each DMA moves a decent chunk, but keep >= 2 grid steps so both
        # v7x TensorCores get work.
        t_hw = HW
        hw_pad = _round_up(HW, 128)
        per_op_bytes = io_bytes * cl * hw_pad
        target = 512 * 1024
        for cand in range(2, N + 1):
            if N % cand != 0:
                continue
            if N // cand < 2 and N >= 2:
                break                         # would idle a v7x TensorCore
            if vmem(cand, hw_pad) > budget_bytes:
                break
            if per_op_bytes * nb >= target:
                break
            nb = cand

    # A lone (1, 1) grid leaves one v7x TensorCore idle: split the pixel axis.
    if (N + nb - 1) // nb == 1 and (HW + t_hw - 1) // t_hw == 1 and HW > 128:
        t_hw = _round_up((HW + 1) // 2, 128)

    return nb, t_hw


def _fold_bn(weight, gamma, beta, mean, var, eps=1e-5):
    """Fold eval-mode BatchNorm into a 1x1 conv: y = W_folded x + b."""
    scale = gamma / jnp.sqrt(var + eps)                 # (C_out,)
    w_folded = weight * scale[:, None]                  # (C_out, C_in)
    b = beta - mean * scale                             # (C_out,)
    return w_folded, b


def attention_gate(g, x_l, params, *,
                   io_dtype=jnp.float32,
                   vmem_budget_bytes=20 * 1024 * 1024,
                   vmem_limit_bytes=32 * 1024 * 1024,
                   max_tile_hw=16384,
                   alias_x_to_out=False):
    """g, x_l: NCHW arrays. Returns alpha * x_l in NCHW (dtype = io_dtype).

    io_dtype=jnp.bfloat16 enables the bandwidth-halving bf16 I/O path
    (looser tolerances); default f32 matches the PyTorch module closely.
    """
    N, F_g, H, W = g.shape
    _, F_l, _, _ = x_l.shape
    F_int = params["wg"].shape[0]
    HW = H * W
    io_bytes = jnp.dtype(io_dtype).itemsize

    # Fold BN into conv weights (host-side glue, plain JAX; tiny tensors).
    wg_f, bg = _fold_bn(params["wg"], params["bn_g_gamma"], params["bn_g_beta"],
                        params["bn_g_mean"], params["bn_g_var"])
    wx_f, bx = _fold_bn(params["wx"], params["bn_x_gamma"], params["bn_x_beta"],
                        params["bn_x_mean"], params["bn_x_var"])
    wp_f, bp = _fold_bn(params["wpsi"], params["bn_p_gamma"], params["bn_p_beta"],
                        params["bn_p_mean"], params["bn_p_var"])

    # NCHW -> (N, C, H*W): a free reshape, no transpose / extra HBM traffic.
    g3 = g.reshape(N, F_g, HW).astype(io_dtype)
    x3 = x_l.reshape(N, F_l, HW).astype(io_dtype)

    # Matmul weights follow the I/O dtype (bf16 goes straight to the MXU);
    # all elementwise constants stay f32.
    wg_m = jnp.asarray(wg_f, io_dtype)                            # (F_int, F_g)
    wx_m = jnp.asarray(wx_f, io_dtype)                            # (F_int, F_l)
    consts = jnp.stack(
        [jnp.asarray(bg + bx, jnp.float32),                       # combined bias
         jnp.asarray(wp_f.reshape(F_int), jnp.float32)],          # psi weight
        axis=1)                                                   # (F_int, 2)
    bp_s = jnp.asarray(bp.reshape(1, 1), jnp.float32)             # (1,1) scalar

    nb, t_hw = _plan_tiles(N, HW, F_g, F_l, F_int, io_bytes,
                           vmem_budget_bytes, max_tile_hw)
    grid = (pl.cdiv(N, nb), pl.cdiv(HW, t_hw))

    extra_kwargs = {}
    if alias_x_to_out:
        # Reuse x_l's HBM buffer for the output (caller must not reuse x_l).
        extra_kwargs["input_output_aliases"] = {1: 0}

    out3 = pl.pallas_call(
        _attention_gate_kernel,
        out_shape=jax.ShapeDtypeStruct((N, F_l, HW), io_dtype),
        grid_spec=pltpu.PrefetchScalarGridSpec(
            num_scalar_prefetch=0,
            grid=grid,
            in_specs=[
                # pixels: small batch block, full channels, lane-dense tile
                pl.BlockSpec((nb, F_g, t_hw), lambda n, t: (n, 0, t)),
                pl.BlockSpec((nb, F_l, t_hw), lambda n, t: (n, 0, t)),
                # weights / packed constants: same block every step
                pl.BlockSpec((F_int, F_g), lambda n, t: (0, 0)),
                pl.BlockSpec((F_int, F_l), lambda n, t: (0, 0)),
                pl.BlockSpec((F_int, 2), lambda n, t: (0, 0)),
                # scalar psi BN bias lives in SMEM (no VMEM tile / DMA stream)
                pl.BlockSpec(memory_space=pltpu.MemorySpace.SMEM),
            ],
            out_specs=pl.BlockSpec((nb, F_l, t_hw), lambda n, t: (n, 0, t)),
        ),
        compiler_params=pltpu.CompilerParams(
            dimension_semantics=("parallel", "parallel"),
            # Stay at/below the scoped default; safe on v7x (64 MiB part).
            # On v6e/v5e callers may raise both the budget and this limit.
            vmem_limit_bytes=vmem_limit_bytes,
        ),
        **extra_kwargs,
    )(g3, x3, wg_m, wx_m, consts, bp_s)

    # (N, C, H*W) -> NCHW: free reshape.
    return out3.reshape(N, F_l, H, W)


def _reference(g, x_l, params):
    """Plain-JAX reference of the same forward pass (NCHW, eval-mode BN)."""
    def conv1x1(t, w):  # t: NCHW, w: (Cout, Cin)
        return jnp.einsum("nchw,oc->nohw", t, w)

    def bn(t, gamma, beta, mean, var, eps=1e-5):
        s = gamma / jnp.sqrt(var + eps)
        return t * s[None, :, None, None] + (beta - mean * s)[None, :, None, None]

    gg = bn(conv1x1(g, params["wg"]), params["bn_g_gamma"], params["bn_g_beta"],
            params["bn_g_mean"], params["bn_g_var"])
    xx = bn(conv1x1(x_l, params["wx"]), params["bn_x_gamma"], params["bn_x_beta"],
            params["bn_x_mean"], params["bn_x_var"])
    a = jnp.maximum(gg + xx, 0.0)
    p = bn(conv1x1(a, params["wpsi"]), params["bn_p_gamma"], params["bn_p_beta"],
           params["bn_p_mean"], params["bn_p_var"])
    alpha = jax.nn.sigmoid(p)
    return alpha * x_l


def _make_params(key, F_g, F_l, F_int):
    keys = jax.random.split(key, 11)
    return {
        # conv weights (Cout, Cin) for 1x1 convs, no bias
        "wg": jax.random.normal(keys[0], (F_int, F_g), jnp.float32) * 0.1,
        "wx": jax.random.normal(keys[1], (F_int, F_l), jnp.float32) * 0.1,
        "wpsi": jax.random.normal(keys[2], (1, F_int), jnp.float32) * 0.1,
        # BatchNorm2d params (eval mode)
        "bn_g_gamma": 1.0 + 0.1 * jax.random.normal(keys[3], (F_int,), jnp.float32),
        "bn_g_beta": 0.1 * jax.random.normal(keys[4], (F_int,), jnp.float32),
        "bn_g_mean": 0.05 * jax.random.normal(keys[5], (F_int,), jnp.float32),
        "bn_g_var": jnp.abs(1.0 + 0.1 * jax.random.normal(keys[6], (F_int,), jnp.float32)),
        "bn_x_gamma": 1.0 + 0.1 * jax.random.normal(keys[7], (F_int,), jnp.float32),
        "bn_x_beta": 0.1 * jax.random.normal(keys[8], (F_int,), jnp.float32),
        "bn_x_mean": 0.05 * jax.random.normal(keys[9], (F_int,), jnp.float32),
        "bn_x_var": jnp.abs(1.0 + 0.1 * jax.random.normal(keys[10], (F_int,), jnp.float32)),
        "bn_p_gamma": jnp.array([1.05], jnp.float32),
        "bn_p_beta": jnp.array([0.02], jnp.float32),
        "bn_p_mean": jnp.array([0.01], jnp.float32),
        "bn_p_var": jnp.array([0.9], jnp.float32),
    }


if __name__ == "__main__":
    key = jax.random.PRNGKey(0)
    F_g, F_l, F_int = 4, 4, 8
    pkey, dkey = jax.random.split(key)
    params = _make_params(pkey, F_g, F_l, F_int)

    # --- case 1: N=2, 16x16 (grid (2,1), nb=1) ---------------------------
    k1, k2, k3, k4, k5, k6 = jax.random.split(dkey, 6)
    g1 = jax.random.normal(k1, (2, F_g, 16, 16), jnp.float32)
    x1 = jax.random.normal(k2, (2, F_l, 16, 16), jnp.float32)
    out1 = jax.block_until_ready(attention_gate(g1, x1, params))
    ref1 = _reference(g1, x1, params)
    assert out1.shape == x1.shape
    assert jnp.allclose(out1, ref1, atol=1e-5, rtol=1e-5), \
        f"case1 max err {jnp.max(jnp.abs(out1 - ref1))}"

    # --- case 2: N=4, 8x8 (small-HW regime: batch block nb=2) ------------
    g2 = jax.random.normal(k3, (4, F_g, 8, 8), jnp.float32)
    x2 = jax.random.normal(k4, (4, F_l, 8, 8), jnp.float32)
    out2 = jax.block_until_ready(attention_gate(g2, x2, params))
    ref2 = _reference(g2, x2, params)
    assert jnp.allclose(out2, ref2, atol=1e-5, rtol=1e-5), \
        f"case2 max err {jnp.max(jnp.abs(out2 - ref2))}"

    # --- case 3: N=1, 16x16 (pixel axis split so >=2 parallel steps) -----
    g3 = jax.random.normal(k5, (1, F_g, 16, 16), jnp.float32)
    x3 = jax.random.normal(k6, (1, F_l, 16, 16), jnp.float32)
    out3 = jax.block_until_ready(attention_gate(g3, x3, params))
    ref3 = _reference(g3, x3, params)
    assert jnp.allclose(out3, ref3, atol=1e-5, rtol=1e-5), \
        f"case3 max err {jnp.max(jnp.abs(out3 - ref3))}"

    # --- case 4: opt-in bf16 I/O path (bandwidth optimization) -----------
    out_bf16 = jax.block_until_ready(
        attention_gate(g1, x1, params, io_dtype=jnp.bfloat16))
    assert jnp.allclose(out_bf16.astype(jnp.float32), ref1,
                        atol=5e-2, rtol=5e-2), \
        f"bf16 max err {jnp.max(jnp.abs(out_bf16.astype(jnp.float32) - ref1))}"

    print("KERNEL_OK")
</pallas_src>

<mosaic_0001>
module attributes {stable_mosaic.version = 11 : i64} {
  func.func @_attention_gate_kernel(%arg0: i32, %arg1: i32, %arg2: memref<1x4x256xf32, #tpu.memory_space<vmem>>, %arg3: memref<1x4x256xf32, #tpu.memory_space<vmem>>, %arg4: memref<8x4xf32, #tpu.memory_space<vmem>>, %arg5: memref<8x4xf32, #tpu.memory_space<vmem>>, %arg6: memref<8x2xf32, #tpu.memory_space<vmem>>, %arg7: memref<1x1xf32, #tpu.memory_space<smem>>, %arg8: memref<1x4x256xf32, #tpu.memory_space<vmem>>) attributes {dimension_semantics = [#tpu.dimension_semantics<parallel>, #tpu.dimension_semantics<parallel>], iteration_bounds = array<i64: 2, 1>, scalar_prefetch = 0 : i64, scratch_operands = 0 : i64, tpu.core_type = #tpu.core_type<tc>, window_params = [{transform_indices = @transform_0, window_bounds = array<i64: 1, 4, 256>}, {transform_indices = @transform_1, window_bounds = array<i64: 1, 4, 256>}, {pipeline_mode = #tpu.pipeline_mode<synchronous>, transform_indices = @transform_2, window_bounds = array<i64: 8, 4>}, {pipeline_mode = #tpu.pipeline_mode<synchronous>, transform_indices = @transform_3, window_bounds = array<i64: 8, 4>}, {pipeline_mode = #tpu.pipeline_mode<synchronous>, transform_indices = @transform_4, window_bounds = array<i64: 8, 2>}, {transform_indices = @transform_5, window_bounds = array<i64: 1, 1>}, {transform_indices = @transform_6, window_bounds = array<i64: 1, 4, 256>}]} {
    %c0 = arith.constant 0 : index
    %c0_0 = arith.constant 0 : index
    %0 = vector.load %arg6[%c0, %c0_0] : memref<8x2xf32, #tpu.memory_space<vmem>>, vector<8x2xf32>
    %1 = vector.extract_strided_slice %0 {offsets = [0, 0], sizes = [8, 1], strides = [1, 1]} : vector<8x2xf32> to vector<8x1xf32>
    %2 = vector.extract_strided_slice %0 {offsets = [0, 1], sizes = [8, 1], strides = [1, 1]} : vector<8x2xf32> to vector<8x1xf32>
    %c0_1 = arith.constant 0 : index
    %c0_2 = arith.constant 0 : index
    %3 = memref.load %arg7[%c0_1, %c0_2] : memref<1x1xf32, #tpu.memory_space<smem>>
    %c0_3 = arith.constant 0 : index
    %c0_4 = arith.constant 0 : index
    %4 = vector.load %arg4[%c0_3, %c0_4] : memref<8x4xf32, #tpu.memory_space<vmem>>, vector<8x4xf32>
    %c0_5 = arith.constant 0 : index
    %c0_6 = arith.constant 0 : index
    %5 = vector.load %arg5[%c0_5, %c0_6] : memref<8x4xf32, #tpu.memory_space<vmem>>, vector<8x4xf32>
    %c0_7 = arith.constant 0 : index
    %c0_8 = arith.constant 0 : index
    %c0_9 = arith.constant 0 : index
    %6 = vector.load %arg2[%c0_7, %c0_8, %c0_9] : memref<1x4x256xf32, #tpu.memory_space<vmem>>, vector<1x4x256xf32>
    %7 = vector.shape_cast %6 : vector<1x4x256xf32> to vector<4x256xf32>
    %c0_10 = arith.constant 0 : index
    %c0_11 = arith.constant 0 : index
    %c0_12 = arith.constant 0 : index
    %8 = vector.load %arg3[%c0_10, %c0_11, %c0_12] : memref<1x4x256xf32, #tpu.memory_space<vmem>>, vector<1x4x256xf32>
    %9 = vector.shape_cast %8 : vector<1x4x256xf32> to vector<4x256xf32>
    %cst = arith.constant dense<0.000000e+00> : vector<8x256xf32>
    %10 = tpu.matmul %4, %7, %cst {dimension_numbers = #tpu.dot_dimension_numbers<[1], [0], [0], [1], [0, 0, 1, 1], [], []>} : vector<8x4xf32>, vector<4x256xf32>, vector<8x256xf32> -> vector<8x256xf32>
    %cst_13 = arith.constant dense<0.000000e+00> : vector<8x256xf32>
    %11 = tpu.matmul %5, %9, %cst_13 {dimension_numbers = #tpu.dot_dimension_numbers<[1], [0], [0], [1], [0, 0, 1, 1], [], []>} : vector<8x4xf32>, vector<4x256xf32>, vector<8x256xf32> -> vector<8x256xf32>
    %12 = arith.addf %10, %11 : vector<8x256xf32>
    %13 = vector.broadcast %1 : vector<8x1xf32> to vector<8x256xf32>
    %14 = arith.addf %12, %13 : vector<8x256xf32>
    %cst_14 = arith.constant 0.000000e+00 : f32
    %15 = vector.broadcast %cst_14 : f32 to vector<8x256xf32>
    %16 = arith.maximumf %14, %15 : vector<8x256xf32>
    %17 = vector.broadcast %2 : vector<8x1xf32> to vector<8x256xf32>
    %18 = arith.mulf %16, %17 : vector<8x256xf32>
    %cst_15 = arith.constant dense<0.000000e+00> : vector<256xf32>
    %19 = vector.multi_reduction <add>, %18, %cst_15 [0] : vector<8x256xf32> to vector<256xf32>
    %20 = vector.shape_cast %19 : vector<256xf32> to vector<1x256xf32>
    %21 = vector.broadcast %3 : f32 to vector<1x256xf32>
    %22 = arith.addf %20, %21 : vector<1x256xf32>
    %23 = arith.negf %22 : vector<1x256xf32>
    %24 = math.exp %23 : vector<1x256xf32>
    %cst_16 = arith.constant 1.000000e+00 : f32
    %25 = vector.broadcast %cst_16 : f32 to vector<1x256xf32>
    %26 = arith.addf %25, %24 : vector<1x256xf32>
    %27 = arith.divf %25, %26 : vector<1x256xf32>
    %28 = vector.broadcast %27 : vector<1x256xf32> to vector<4x256xf32>
    %29 = arith.mulf %28, %9 : vector<4x256xf32>
    %c0_17 = arith.constant 0 : index
    %c0_18 = arith.constant 0 : index
    %c0_19 = arith.constant 0 : index
    %30 = vector.load %arg8[%c0_17, %c0_18, %c0_19] : memref<1x4x256xf32, #tpu.memory_space<vmem>>, vector<1x4x256xf32>
    %31 = vector.shape_cast %30 : vector<1x4x256xf32> to vector<4x256xf32>
    %32 = vector.shape_cast %29 : vector<4x256xf32> to vector<1x4x256xf32>
    tpu.vector_store %arg8[%c0_17, %c0_18, %c0_19], %32 {strides = array<i32>} : memref<1x4x256xf32, #tpu.memory_space<vmem>>, vector<1x4x256xf32>,
    return
  }
  func.func @transform_0(%arg0: i32, %arg1: i32) -> (i32, i32, i32) {
    %c0_i32 = arith.constant 0 : i32
    %c0_i32_0 = arith.constant 0 : i32
    return %arg0, %c0_i32, %arg1 : i32, i32, i32
  }
  func.func @transform_1(%arg0: i32, %arg1: i32) -> (i32, i32, i32) {
    %c0_i32 = arith.constant 0 : i32
    %c0_i32_0 = arith.constant 0 : i32
    return %arg0, %c0_i32, %arg1 : i32, i32, i32
  }
  func.func @transform_2(%arg0: i32, %arg1: i32) -> (i32, i32) {
    %c0_i32 = arith.constant 0 : i32
    %c0_i32_0 = arith.constant 0 : i32
    %c0_i32_1 = arith.constant 0 : i32
    return %c0_i32, %c0_i32_0 : i32, i32
  }
  func.func @transform_3(%arg0: i32, %arg1: i32) -> (i32, i32) {
    %c0_i32 = arith.constant 0 : i32
    %c0_i32_0 = arith.constant 0 : i32
    %c0_i32_1 = arith.constant 0 : i32
    return %c0_i32, %c0_i32_0 : i32, i32
  }
  func.func @transform_4(%arg0: i32, %arg1: i32) -> (i32, i32) {
    %c0_i32 = arith.constant 0 : i32
    %c0_i32_0 = arith.constant 0 : i32
    %c0_i32_1 = arith.constant 0 : i32
    return %c0_i32, %c0_i32_0 : i32, i32
  }
  func.func @transform_5(%arg0: i32, %arg1: i32) -> (i32, i32) {
    %c0_i32 = arith.constant 0 : i32
    %c0_i32_0 = arith.constant 0 : i32
    %c0_i32_1 = arith.constant 0 : i32
    return %c0_i32, %c0_i32_0 : i32, i32
  }
  func.func @transform_6(%arg0: i32, %arg1: i32) -> (i32, i32, i32) {
    %c0_i32 = arith.constant 0 : i32
    %c0_i32_0 = arith.constant 0 : i32
    return %arg0, %c0_i32, %arg1 : i32, i32, i32
  }
}

</mosaic_0001>

<bundles_post_ra>
// kernel: tpu_custom_call.1
= control target key start
LH: loop header
LB: loop body
LE: loop exit
PB: predicated region body
PF: predicated region fallthrough
CT: control target
= control target key end

     0   :  { %s991_s0 = inlined_call_operand.vmem [shape: f32[2,4,256], index: 0, kind: input, shape index: {}]   ;;  %s992_s1 = inlined_call_operand.vmem [shape: f32[2,4,256], index: 1, kind: input, shape index: {}]   ;;  %s993_s2 = inlined_call_operand.vmem [shape: f32[8,4], index: 2, kind: input, shape index: {}]   ;;  %s994_s3 = inlined_call_operand.vmem [shape: f32[8,4], index: 3, kind: input, shape index: {}]   ;;  %s995_s4 = inlined_call_operand.vmem [shape: f32[8,2], index: 4, kind: input, shape index: {}]   ;;  %s996_s5 = inlined_call_operand.<no memory space> [shape: f32[1,1], index: 5, kind: input, shape index: {}]   ;;  %s997_s6 = inlined_call_operand.hbm [shape: f32[2,4,256], index: 6, kind: output, shape index: {}]  }
   0x1   :  { %11 = sst [smem:[#allocation2]] %s996_s5 }
   0x2   :  { %12 = vsyncpa [#allocation4], 0 }
   0x3   :  { %14 = vsyncpa [#allocation4 + $0x1], 0  ;;  %s867_s23 = smov 0   ;;  %s869_s24 = smov 0  }
   0x4   :  { %s871_s25 = smov 0   ;;  %s873_s26 = smov 0  }
   0x5   :  { %s875_s27 = smov 0   ;;  %s877_s28 = smov 0  }
   0x6 LB: > { %s647_s5 = sadd.s32 4294967295, %s823_s28   ;;  %s648_s29 = sadd.s32 4294967294, %s823_s28   ;;  %s823_s28 = sphi %s877_s28, %s20_s28   ;;  %s819_s27 = sphi %s875_s27, %s1004_s27   ;;  %s815_s26 = sphi %s873_s26, %s1003_s26   ;;  %s811_s25 = sphi %s871_s25, %s1002_s25   ;;  %s807_s24 = sphi %s869_s24, %s1001_s24   ;;  %s803_s23 = sphi %s867_s23, %s1000_s23  }
   0x7   : > { %s32_s30 = sadd.s32 1, %s819_s27  ;;  %s181_s7 = sadd.s32 1, %s811_s25 }
   0x8   : > { %p34_p0 = scmp.ge.s32.totalorder %s32_s30, 2  ;;  %p191_p1 = scmp.ne.s32.totalorder %s811_s25, %s807_s24 }
   0x9   : > { %p192_p2 = scmp.eq.s32.totalorder %s647_s5, 1  ;;  %p197_p3 = scmp.ne.s32.totalorder %s807_s24, %s803_s23 }
   0xa   : > { %s1006_s30 = smov (%p34_p0, %s32_s30), 0  ;;  %p198_p5 = scmp.eq.s32.totalorder %s648_s29, 1 }
   0xb   : > { %p907_p4 = por %p192_p2, %p191_p1  ;;  %s176_s9 = ssub.s32 %s819_s27, %s1006_s30 }
   0xc   : > { %p651_p6 = scmp.ge.s32.totalorder %s823_s28, 1  ;;  %p179_p7 = scmp.eq.s32.totalorder %s176_s9, 0 }
   0xd   : > { %p914_p8 = por %p198_p5, %p197_p3  ;;  %p254_p9 = scmp.lt.s32.totalorder %s823_s28, 3 }
   0xe   : > { %s920_s11 = scalar_select %p179_p7, %s811_s25, %s181_s7  }
   0xf   : > { %p255_p10 = pnand %p651_p6, %p254_p9 }
  0x10   : > { %p298_p11 = scmp.lt.s32.totalorder (!%p255_p10), %s815_s26, 1  ;;  %v825_v0 = vmov (!%p255_p10), 0.0   ;;  %v318_v1 = vld [vmem:[%s995_s4] sm:$0xff] (!%p255_p10)  ;;  %v826_v2 = vmov (!%p255_p10), 0   ;;  %vm330_vm0 = vcmask (!%p255_p10), 1043456   ;;  %v827_v7 = vmov (!%p255_p10), 1  }
  0x11   : > { %258 = sbr.rel (%p255_p10) target bundleno = 313 (0x139), region = 44  ;;  %399 = vmatprep.mubr.f32.mxu1 (!%p255_p10), %v825_v0  ;;  %479 = vmatprep.mubr.f32.mxu0 (!%p255_p10), %v825_v0  ;;  %v321_v8 = vld [vmem:[%s994_s3] sm:$0xff] (!%p255_p10)  ;;  %vm326_vm1 = vcmask (!%p255_p10), 31744   ;;  %s319_s9 = sld [smem:[#allocation2]] (!%p255_p10) }
  0x12   : > { %733 = vset.pattern.permute.xlu0 (!%p255_p10), %v826_v2  ;;  %v320_v9 = vld [vmem:[%s993_s2] sm:$0xff] (!%p255_p10)  ;;  %s294_s12 = sand.u32 (!%p255_p10), 1, %s807_s24  }
  0x13   : > { %488 = vperm.xlu0 (!%p255_p10), %733, %v318_v1   ;;  %s652_s13 = sshll.u32 (!%p255_p10), %s294_s12, 3  ;;  %s537_s20 = scalar_lea.sflag (!%p255_p10), [#allocation4], %s294_s12 }
  0x17   : > { %734 = vset.pattern.permute.xlu0 (!%p255_p10), %v827_v7  ;;  %v513_v33 = vstv (!%p255_p10), %s319_s9 }
  0x18   : > { %s299_s14 = scalar_select %p298_p11, %s815_s26, 1  ;;  %496 = vperm.xlu0 %734, %v318_v1  }
  0x1a   : > { %s670_s15 = sshll.u32 %s299_s14, 3  ;;  %s672_s14 = sshll.u32 %s815_s26, 7 }
  0x1b   : > { %s315_s18 = scalar_lea.vmem %s992_s1, %s670_s15  ;;  %s305_s21 = scalar_lea.vmem %s991_s0, %s670_s15 }
  0x1c   : > { %v323_v3 = vld [vmem:[%s315_s18] sm:$0xff]  ;;  %s296_s15 = scalar_lea.vmem [#allocation3], %s652_s13  ;;  %s944_s19 = scalar_lea.hbm %s997_s6, %s672_s14 }
  0x1d   : > { %v322_v4 = vld [vmem:[%s305_s21] sm:$0xff]  ;;  %v325_v5 = vcombine.high %v323_v3, %v323_v3  ;;  %s553_s16 = sshll.u32 %s296_s15, 4  ;;  %s828_s26 = smov [#allocation3]   ;;  %s946_s16 = int_to_ptr.vmem [resolvable:$true] %s553_s16 }
  0x1e   : > { %v407_v6 = vcombine.high %v322_v4, %v322_v4  ;;  %s745_s21 = scalar_lea.vmem %s946_s16, 128  ;;  %s749_s22 = sshll.u32 %s828_s26, 4  ;;  %s750_s22 = int_to_ptr.vmem [resolvable:$false] %s749_s22 }
  0x1f   : > { %657 = vmatprep.subr.msk.mxu1 %vm330_vm0, %v325_v5  ;;  %p746_p12 = scmp.ne.s32.totalorder %s946_s16, %s745_s21  ;;  %s751_s5 = scalar_lea.vmem %s750_s22, 256 }
  0x20   : > { %660 = vmatprep.subr.msk.mxu0 %vm330_vm0, %v407_v6  ;;  %658 = vmatpush1.msk.msra.mxu1 %vm330_vm0, %v323_v3  ;;  %p752_p1 = scmp.lt.s32.totalorder %s946_s16, %s750_s22  ;;  %p753_p2 = scmp.lt.s32.totalorder %s751_s5, %s745_s21 }
  0x21   : > { %661 = vmatpush1.msk.msra.mxu0 %vm330_vm0, %v322_v4  ;;  %659 = vmatmul.mubr.msk.f32.vlgmr.msra.gmra.mrb[0].mxu1 %vm326_vm1, %v321_v8  ;;  %p747_p13 = pnand %p746_p12, %p907_p4 }
  0x22   : > { %662 = vmatmul.mubr.msk.f32.vlgmr.msra.gmra.mrb[0].mxu0 %vm326_vm1, %v320_v9  ;;  %p754_p3 = por %p753_p2, %p752_p1 }
  0x23   : > { %p748_p0 = pneg %p747_p13 }
  0x25   : > { %p755_p5 = pnand %p754_p3, %p748_p0 }
  0x92   : > { %v489_v10 = vpop.permute.xlu0 %488 }
  0x97   : > { %v497_v19 = vpop.permute.xlu0 %496 }
  0xf4   : > { %v401_v11 = vpop.f32.mrb[0].mxu1 }
  0xf5   : > { %v481_v12 = vpop.f32.mrb[0].mxu0  ;;  %v403_v14 = vpop.f32.mrb[1].mxu1 }
  0xf6   : > { %v482_v13 = vadd.f32 %v481_v12, %v401_v11  ;;  %v483_v15 = vpop.f32.mrb[1].mxu0 }
  0xf7   : > { %v484_v16 = vadd.f32 %v483_v15, %v403_v14 }
  0xf8   : > { %v491_v17 = vadd.f32 %v489_v10, %v482_v13 }
  0xf9   : > { %v492_v18 = vadd.f32 %v489_v10, %v484_v16 }
  0xfa   : > { %v493_v20 = vmax.f32 %v491_v17, 0.0 }
  0xfb   : > { %v494_v21 = vmax.f32 %v492_v18, 0.0 }
  0xfc   : > { %v499_v22 = vmul.f32 %v497_v19, %v493_v20 }
  0xfd   : > { %v500_v23 = vmul.f32 %v497_v19, %v494_v21 }
  0xfe   : > { %v501_v24 = vrot.slane %v499_v22, 4 }
  0xff   : > { %v507_v25 = vrot.slane %v500_v23, 4 }
 0x100   : > { %v502_v26 = vadd.f32 %v501_v24, %v499_v22 }
 0x101   : > { %v508_v27 = vadd.f32 %v507_v25, %v500_v23 }
 0x102   : > { %v503_v28 = vrot.slane %v502_v26, 2 }
 0x103   : > { %v509_v29 = vrot.slane %v508_v27, 2 }
 0x104   : > { %v504_v30 = vadd.f32 %v503_v28, %v502_v26 }
 0x105   : > { %v510_v31 = vadd.f32 %v509_v29, %v508_v27 }
 0x106   : > { %v505_v32 = vrot.slane %v504_v30, 1 }
 0x107   : > { %v511_v34 = vrot.slane %v510_v31, 1 }
 0x108   : > { %v506_v35 = vadd.f32 %v505_v32, %v504_v30 }
 0x109   : > { %v512_v36 = vadd.f32 %v511_v34, %v510_v31 }
 0x10a   : > { %v514_v37 = vadd.f32 %v513_v33, %v506_v35 }
 0x10b   : > { %v515_v38 = vadd.f32 %v513_v33, %v512_v36 }
 0x10c   : > { %v663_v39 = vmul.f32 -1.442695, %v514_v37 }
 0x10d   : > { %v664_v40 = vmul.f32 -1.442695, %v515_v38 }
 0x10e   : > { %737 = vpow2.f32 %v663_v39 }
 0x10f   : > { %739 = vpow2.f32 %v664_v40 }
 0x118   : > { %v738_v41 = vpop.eup %737 }
 0x119   : > { %v740_v42 = vpop.eup %739  ;;  %v522_v43 = vadd.f32 1.0, %v738_v41 }
 0x11a   : > { %v523_v44 = vadd.f32 1.0, %v740_v42 }
 0x11b   : > { %741 = vrcp.f32 %v522_v43 }
 0x11c   : > { %743 = vrcp.f32 %v523_v44 }
 0x125   : > { %v742_v45 = vpop.eup %741 }
 0x126   : > { %v744_v46 = vpop.eup %743  ;;  %v529_v47 = vmul.f32 %v742_v45, %v323_v3 }
 0x127   : > { %v530_v48 = vmul.f32 %v744_v46, %v325_v5 }
 0x129   : > { %v533_v49 = vcombine.low %v529_v47, %v530_v48 }
 0x12b   : > { %535 = vst [vmem:[%s296_s15] sm:$0xff] %v533_v49 }
 0x12c   : > { %758 = shalt.err (!%p755_p5)
}
 0x12d   : > { %s759_s29 = scalar_lea.hbm %s944_s19, 128  ;;  %s763_s12 = scalar_lea.hbm %s997_s6, 256 }
 0x12e   : > { %p760_p6 = scmp.ne.s32.totalorder %s944_s19, %s759_s29  ;;  %p764_p10 = scmp.lt.u32.totalorder %s944_s19, %s997_s6 }
 0x12f   : > { %p765_p11 = scmp.lt.u32.totalorder %s763_s12, %s759_s29  ;;  %p767_p13 = scmp.lt.u32.totalorder %s759_s29, %s944_s19 }
 0x130   : > { %p761_p7 = pnand %p760_p6, %p907_p4 }
 0x131   : > { %p766_p12 = por %p765_p11, %p764_p10 }
 0x132   : > { %p762_p9 = pneg %p761_p7 }
 0x133   : > { %p768_p0 = por %p767_p13, %p766_p12 }
 0x135   : > { %p769_p1 = pnand %p768_p0, %p762_p9 }
 0x137   : > { %772 = shalt.err (!%p769_p1)
}
 0x138   : > { %675 = dma.vmem_to_hbm [thread:$0]  (%p907_p4), %s946_s16, 128, %s944_s19, %s537_s20  }
 0x139 PF: > { %p681_p2 = scmp.ge.s32.totalorder %s823_s28, 2  ;;  %s565_s15 = sand.u32 1, %s803_s23  }
 0x13a   : > { %s566_s17 = scalar_lea.sflag [#allocation4], %s565_s15 }
 0x13b   : > { %p678_p3 = pnand %p681_p2, %p914_p8 }
 0x13d   : > { %798 = dma.done.wait (!%p678_p3), %s566_s17, 128  }
 0x13e   : > { %800 = vsyncadd (!%p678_p3), %s566_s17, 4294967168  ;;  %s20_s28 = sadd.s32 1, %s823_s28   ;;  %s1000_s23 = smov %s807_s24 }
 0x13f   : > { %p17_p5 = scmp.ge.s32.totalorder %s20_s28, 4   ;;  %s1001_s24 = smov %s811_s25 }
 0x140   : > { %s1002_s25 = smov %s920_s11  ;;  %s1003_s26 = smov %s819_s27 }
 0x141   : > { %s1004_s27 = smov %s1006_s30  ;;  %19 = sbr.rel (!%p17_p5) target bundleno = 6 (0x6), region = 82 }
 0x148   :  { %571 = vsyncpa [#allocation4], 1 }
 0x149   :  { %573 = vsyncpa [#allocation4 + $0x1], 1 }

</bundles_post_ra>
